<compile_context>
chip_gen: v7x
topology: tpu7x:2x2x1
jax: 0.10.0
libtpu: 0.0.40
codegen_flags: <defaults>
</compile_context>

<pallas_src>
from typing import NamedTuple

import jax
import jax.numpy as jnp
from jax.experimental import pallas as pl
from jax.experimental.pallas import tpu as pltpu

_LANE = 128
_SUB = 8


def _round_up(n, m):
    return ((n + m - 1) // m) * m


class ResidualBlockParams(NamedTuple):
    """Folded + padded params. w1/w2: (Dp, Dp) bf16 (by default); b1/b2: (1, Dp) f32."""
    w1: jax.Array
    b1: jax.Array
    w2: jax.Array
    b2: jax.Array


def prepare_params(w1, b1, gamma1, beta1, mean1, var1,
                   w2, b2, gamma2, beta2, mean2, var2,
                   eps=1e-5, param_dtype=jnp.bfloat16):
    """One-time fold of BatchNorm (eval) + bias into the Linear weights, lane-dense padded."""
    D = w1.shape[0]
    f32 = jnp.float32

    s1 = (gamma1 / jnp.sqrt(var1 + eps)).astype(f32)
    t1 = beta1.astype(f32) - mean1.astype(f32) * s1
    s2 = (gamma2 / jnp.sqrt(var2 + eps)).astype(f32)
    t2 = beta2.astype(f32) - mean2.astype(f32) * s2

    # (x @ W.T + b) * s + t == x @ (W.T * s) + (b * s + t)
    w1f = w1.astype(f32).T * s1[None, :]
    b1f = b1.astype(f32) * s1 + t1
    w2f = w2.astype(f32).T * s2[None, :]
    b2f = b2.astype(f32) * s2 + t2

    Dp = _round_up(max(D, _LANE), _LANE)
    w1p = jnp.zeros((Dp, Dp), param_dtype).at[:D, :D].set(w1f.astype(param_dtype))
    w2p = jnp.zeros((Dp, Dp), param_dtype).at[:D, :D].set(w2f.astype(param_dtype))
    b1p = jnp.zeros((1, Dp), f32).at[0, :D].set(b1f)
    b2p = jnp.zeros((1, Dp), f32).at[0, :D].set(b2f)
    return ResidualBlockParams(w1=w1p, b1=b1p, w2=w2p, b2=b2p)


def _residual_block_kernel(x_ref, w1_ref, b1_ref, w2_ref, b2_ref, o_ref):
    mxu_dt = w1_ref.dtype  # bf16 MXU operands; f32 accumulation and epilogue

    # fc1 + folded bn1 -> relu
    h1 = jnp.dot(x_ref[...].astype(mxu_dt), w1_ref[...],
                 preferred_element_type=jnp.float32) + b1_ref[...]
    h1 = jnp.maximum(h1, 0.0)

    # fc2 + folded bn2 -> relu
    h2 = jnp.dot(h1.astype(mxu_dt), w2_ref[...],
                 preferred_element_type=jnp.float32) + b2_ref[...]
    h2 = jnp.maximum(h2, 0.0)

    # residual add: re-read the x tile (don't hold it live across both MXU chains)
    o_ref[...] = (h2 + x_ref[...].astype(jnp.float32)).astype(o_ref.dtype)


def _residual_block_xla(params, x):
    """Small-problem fallback: fused XLA is faster than launch/DMA overhead."""
    D = x.shape[1]
    w1 = params.w1[:D, :D]
    b1 = params.b1[0, :D]
    w2 = params.w2[:D, :D]
    b2 = params.b2[0, :D]
    h1 = jnp.maximum(
        jnp.dot(x.astype(w1.dtype), w1, preferred_element_type=jnp.float32) + b1, 0.0)
    h2 = jnp.maximum(
        jnp.dot(h1.astype(w2.dtype), w2, preferred_element_type=jnp.float32) + b2, 0.0)
    return (h2 + x.astype(jnp.float32)).astype(x.dtype)


def _vmem_limit_bytes():
    try:
        cap = getattr(pltpu.get_tpu_info(), "vmem_capacity_bytes", None)
    except Exception:
        cap = None
    if cap is None:
        return None
    # ~12.5% headroom for compiler scratch/spills: ~56 MiB on v7x, ~112 MiB on v5e/v6e.
    return int(cap - cap // 8)


def residual_block_apply(params, x, *, block_b=512, use_pallas=None):
    B, D = x.shape
    Dp = params.w1.shape[0]
    assert D <= Dp, "x feature dim exceeds prepared parameter dim"

    if use_pallas is None:
        # Tiny problems are pure launch/DMA overhead in the pallas path.
        use_pallas = not (B < 128 and Dp <= 128)
    if not use_pallas:
        return _residual_block_xla(params, x)

    # Batch tile: multiple of 8, <= block_b, and >= 2 grid steps whenever the batch
    # allows it (v7x megacore sharding + BlockSpec pipelining overlap).
    Bp8 = _round_up(B, _SUB)
    half = _round_up(pl.cdiv(Bp8, 2), _SUB)
    tb = max(_SUB, _round_up(min(block_b, half), _SUB))
    Bp = _round_up(B, tb)

    needs_pad = (Bp, Dp) != (B, D)
    xp = jnp.zeros((Bp, Dp), x.dtype).at[:B, :D].set(x) if needs_pad else x

    const2d = lambda i: (0, 0)
    wbytes = params.w1.dtype.itemsize
    cost = pl.CostEstimate(
        flops=4 * Bp * Dp * Dp,                          # two (Bp,Dp)@(Dp,Dp) matmuls
        transcendentals=0,
        bytes_accessed=(2 * Bp * Dp * x.dtype.itemsize   # x in + out
                        + 2 * Dp * Dp * wbytes           # resident weights
                        + 2 * Dp * 4),                   # biases (f32)
    )

    out = pl.pallas_call(
        _residual_block_kernel,
        out_shape=jax.ShapeDtypeStruct((Bp, Dp), x.dtype),
        grid_spec=pltpu.PrefetchScalarGridSpec(
            num_scalar_prefetch=0,
            grid=(Bp // tb,),
            in_specs=[
                pl.BlockSpec((tb, Dp), lambda i: (i, 0)),   # x batch tile (pipelined)
                pl.BlockSpec((Dp, Dp), const2d),            # fused W1' (VMEM-resident)
                pl.BlockSpec((1, Dp), const2d),             # fused b1'
                pl.BlockSpec((Dp, Dp), const2d),            # fused W2'
                pl.BlockSpec((1, Dp), const2d),             # fused b2'
            ],
            out_specs=pl.BlockSpec((tb, Dp), lambda i: (i, 0)),
        ),
        compiler_params=pltpu.CompilerParams(
            dimension_semantics=("parallel",),
            vmem_limit_bytes=_vmem_limit_bytes(),
        ),
        cost_estimate=cost,
    )(xp, params.w1, params.b1, params.w2, params.b2)

    return out[:B, :D] if needs_pad else out


def residual_block(x, w1, b1, gamma1, beta1, mean1, var1,
                   w2, b2, gamma2, beta2, mean2, var2,
                   eps=1e-5, block_b=512, param_dtype=jnp.bfloat16, use_pallas=None):
    """Convenience wrapper: fold/pad params then apply. Prefer prepare_params() once +
    residual_block_apply() per step for weight-stationary use."""
    params = prepare_params(w1, b1, gamma1, beta1, mean1, var1,
                            w2, b2, gamma2, beta2, mean2, var2,
                            eps=eps, param_dtype=param_dtype)
    return residual_block_apply(params, x, block_b=block_b, use_pallas=use_pallas)


def residual_block_ref(x, w1, b1, gamma1, beta1, mean1, var1,
                       w2, b2, gamma2, beta2, mean2, var2, eps=1e-5):
    h1 = x @ w1.T + b1
    h1 = gamma1 * (h1 - mean1) / jnp.sqrt(var1 + eps) + beta1
    h1 = jnp.maximum(h1, 0.0)
    h2 = h1 @ w2.T + b2
    h2 = gamma2 * (h2 - mean2) / jnp.sqrt(var2 + eps) + beta2
    h2 = jnp.maximum(h2, 0.0)
    return h2 + x


if __name__ == "__main__":
    B, D = 256, 32  # hidden dim 32; batch 256 -> two batch tiles through the pallas path

    key = jax.random.PRNGKey(0)
    keys = jax.random.split(key, 11)

    x = jax.random.normal(keys[0], (B, D), dtype=jnp.float32)

    # Deterministic synthetic parameters (nn.Linear(dim, dim) x2, BatchNorm1d(dim) x2).
    lim = 1.0 / jnp.sqrt(D)
    w1 = jax.random.uniform(keys[1], (D, D), minval=-lim, maxval=lim, dtype=jnp.float32)
    b1 = jax.random.uniform(keys[2], (D,),   minval=-lim, maxval=lim, dtype=jnp.float32)
    w2 = jax.random.uniform(keys[3], (D, D), minval=-lim, maxval=lim, dtype=jnp.float32)
    b2 = jax.random.uniform(keys[4], (D,),   minval=-lim, maxval=lim, dtype=jnp.float32)

    gamma1 = 1.0 + 0.1 * jax.random.normal(keys[5], (D,), dtype=jnp.float32)
    beta1  = 0.1 * jax.random.normal(keys[6], (D,), dtype=jnp.float32)
    mean1  = 0.1 * jax.random.normal(keys[7], (D,), dtype=jnp.float32)
    var1   = 1.0 + 0.1 * jax.random.uniform(keys[8], (D,), dtype=jnp.float32)

    gamma2 = 1.0 + 0.1 * jax.random.normal(keys[9], (D,), dtype=jnp.float32)
    beta2  = 0.1 * jax.random.normal(keys[10], (D,), dtype=jnp.float32)
    mean2  = 0.05 * jnp.ones((D,), dtype=jnp.float32)
    var2   = 1.2 * jnp.ones((D,), dtype=jnp.float32)

    # One-time fold/pad (hoisted out of the per-step hot path).
    params = prepare_params(w1, b1, gamma1, beta1, mean1, var1,
                            w2, b2, gamma2, beta2, mean2, var2)
    params = jax.tree_util.tree_map(jax.block_until_ready, params)

    fwd = jax.jit(residual_block_apply)
    out = jax.block_until_ready(fwd(params, x))

    ref = residual_block_ref(x, w1, b1, gamma1, beta1, mean1, var1,
                             w2, b2, gamma2, beta2, mean2, var2)

    assert out.shape == (B, D)
    # bf16 MXU operands -> loosened tolerance vs the f32 reference.
    assert jnp.allclose(out, ref, atol=5e-2, rtol=5e-2), "pallas path mismatch vs reference"

    # Tiny-batch fallback path (plain fused XLA) must also match.
    out_small = jax.block_until_ready(residual_block_apply(params, x[:8]))
    assert out_small.shape == (8, D)
    assert jnp.allclose(out_small, ref[:8], atol=5e-2, rtol=5e-2), "fallback mismatch vs reference"

    print("KERNEL_OK")
</pallas_src>

<mosaic_0001>
module attributes {stable_mosaic.version = 11 : i64} {
  func.func @_residual_block_kernel(%arg0: i32, %arg1: memref<128x128xf32, #tpu.memory_space<vmem>>, %arg2: memref<128x128xbf16, #tpu.memory_space<vmem>>, %arg3: memref<1x128xf32, #tpu.memory_space<vmem>>, %arg4: memref<128x128xbf16, #tpu.memory_space<vmem>>, %arg5: memref<1x128xf32, #tpu.memory_space<vmem>>, %arg6: memref<128x128xf32, #tpu.memory_space<vmem>>) attributes {dimension_semantics = [#tpu.dimension_semantics<parallel>], iteration_bounds = array<i64: 2>, scalar_prefetch = 0 : i64, scratch_operands = 0 : i64, tpu.core_type = #tpu.core_type<tc>, window_params = [{transform_indices = @transform_0, window_bounds = array<i64: 128, 128>}, {pipeline_mode = #tpu.pipeline_mode<synchronous>, transform_indices = @transform_1, window_bounds = array<i64: 128, 128>}, {pipeline_mode = #tpu.pipeline_mode<synchronous>, transform_indices = @transform_2, window_bounds = array<i64: 1, 128>}, {pipeline_mode = #tpu.pipeline_mode<synchronous>, transform_indices = @transform_3, window_bounds = array<i64: 128, 128>}, {pipeline_mode = #tpu.pipeline_mode<synchronous>, transform_indices = @transform_4, window_bounds = array<i64: 1, 128>}, {transform_indices = @transform_5, window_bounds = array<i64: 128, 128>}]} {
    %c0 = arith.constant 0 : index
    %c0_0 = arith.constant 0 : index
    %0 = vector.load %arg1[%c0, %c0_0] : memref<128x128xf32, #tpu.memory_space<vmem>>, vector<128x128xf32>
    %1 = arith.truncf %0 : vector<128x128xf32> to vector<128x128xbf16>
    %c0_1 = arith.constant 0 : index
    %c0_2 = arith.constant 0 : index
    %2 = vector.load %arg2[%c0_1, %c0_2] : memref<128x128xbf16, #tpu.memory_space<vmem>>, vector<128x128xbf16>
    %cst = arith.constant dense<0.000000e+00> : vector<128x128xf32>
    %3 = tpu.matmul %1, %2, %cst {dimension_numbers = #tpu.dot_dimension_numbers<[1], [0], [0], [1], [0, 0, 1, 1], [], []>} : vector<128x128xbf16>, vector<128x128xbf16>, vector<128x128xf32> -> vector<128x128xf32>
    %c0_3 = arith.constant 0 : index
    %c0_4 = arith.constant 0 : index
    %4 = vector.load %arg3[%c0_3, %c0_4] : memref<1x128xf32, #tpu.memory_space<vmem>>, vector<1x128xf32>
    %5 = vector.broadcast %4 : vector<1x128xf32> to vector<128x128xf32>
    %6 = arith.addf %3, %5 : vector<128x128xf32>
    %cst_5 = arith.constant 0.000000e+00 : f32
    %7 = vector.broadcast %cst_5 : f32 to vector<128x128xf32>
    %8 = arith.maximumf %6, %7 : vector<128x128xf32>
    %9 = arith.truncf %8 : vector<128x128xf32> to vector<128x128xbf16>
    %c0_6 = arith.constant 0 : index
    %c0_7 = arith.constant 0 : index
    %10 = vector.load %arg4[%c0_6, %c0_7] : memref<128x128xbf16, #tpu.memory_space<vmem>>, vector<128x128xbf16>
    %cst_8 = arith.constant dense<0.000000e+00> : vector<128x128xf32>
    %11 = tpu.matmul %9, %10, %cst_8 {dimension_numbers = #tpu.dot_dimension_numbers<[1], [0], [0], [1], [0, 0, 1, 1], [], []>} : vector<128x128xbf16>, vector<128x128xbf16>, vector<128x128xf32> -> vector<128x128xf32>
    %c0_9 = arith.constant 0 : index
    %c0_10 = arith.constant 0 : index
    %12 = vector.load %arg5[%c0_9, %c0_10] : memref<1x128xf32, #tpu.memory_space<vmem>>, vector<1x128xf32>
    %13 = vector.broadcast %12 : vector<1x128xf32> to vector<128x128xf32>
    %14 = arith.addf %11, %13 : vector<128x128xf32>
    %cst_11 = arith.constant 0.000000e+00 : f32
    %15 = vector.broadcast %cst_11 : f32 to vector<128x128xf32>
    %16 = arith.maximumf %14, %15 : vector<128x128xf32>
    %c0_12 = arith.constant 0 : index
    %c0_13 = arith.constant 0 : index
    %17 = vector.load %arg1[%c0_12, %c0_13] : memref<128x128xf32, #tpu.memory_space<vmem>>, vector<128x128xf32>
    %18 = arith.addf %16, %17 : vector<128x128xf32>
    %c0_14 = arith.constant 0 : index
    %c0_15 = arith.constant 0 : index
    %19 = vector.load %arg6[%c0_14, %c0_15] : memref<128x128xf32, #tpu.memory_space<vmem>>, vector<128x128xf32>
    tpu.vector_store %arg6[%c0_14, %c0_15], %18 {strides = array<i32>} : memref<128x128xf32, #tpu.memory_space<vmem>>, vector<128x128xf32>,
    return
  }
  func.func @transform_0(%arg0: i32) -> (i32, i32) {
    %c0_i32 = arith.constant 0 : i32
    %c0_i32_0 = arith.constant 0 : i32
    return %arg0, %c0_i32 : i32, i32
  }
  func.func @transform_1(%arg0: i32) -> (i32, i32) {
    %c0_i32 = arith.constant 0 : i32
    %c0_i32_0 = arith.constant 0 : i32
    %c0_i32_1 = arith.constant 0 : i32
    return %c0_i32, %c0_i32_0 : i32, i32
  }
  func.func @transform_2(%arg0: i32) -> (i32, i32) {
    %c0_i32 = arith.constant 0 : i32
    %c0_i32_0 = arith.constant 0 : i32
    %c0_i32_1 = arith.constant 0 : i32
    return %c0_i32, %c0_i32_0 : i32, i32
  }
  func.func @transform_3(%arg0: i32) -> (i32, i32) {
    %c0_i32 = arith.constant 0 : i32
    %c0_i32_0 = arith.constant 0 : i32
    %c0_i32_1 = arith.constant 0 : i32
    return %c0_i32, %c0_i32_0 : i32, i32
  }
  func.func @transform_4(%arg0: i32) -> (i32, i32) {
    %c0_i32 = arith.constant 0 : i32
    %c0_i32_0 = arith.constant 0 : i32
    %c0_i32_1 = arith.constant 0 : i32
    return %c0_i32, %c0_i32_0 : i32, i32
  }
  func.func @transform_5(%arg0: i32) -> (i32, i32) {
    %c0_i32 = arith.constant 0 : i32
    %c0_i32_0 = arith.constant 0 : i32
    return %arg0, %c0_i32 : i32, i32
  }
}

</mosaic_0001>

<bundles_post_ra>
// kernel: residual_block_apply.1
= control target key start
LH: loop header
LB: loop body
LE: loop exit
PB: predicated region body
PF: predicated region fallthrough
CT: control target
= control target key end

     0   :  { %s904_s18 = smov 0   ;;  %s1100_s0 = inlined_call_operand.vmem [shape: f32[256,128], index: 0, kind: input, shape index: {}]   ;;  %s1101_s1 = inlined_call_operand.vmem [shape: bf16[128,128], index: 1, kind: input, shape index: {}]   ;;  %s1102_s2 = inlined_call_operand.vmem [shape: f32[1,128], index: 2, kind: input, shape index: {}]   ;;  %s1103_s3 = inlined_call_operand.vmem [shape: bf16[128,128], index: 3, kind: input, shape index: {}]   ;;  %s1104_s4 = inlined_call_operand.vmem [shape: f32[1,128], index: 4, kind: input, shape index: {}]   ;;  %s1105_s5 = inlined_call_operand.vmem [shape: f32[256,128], index: 5, kind: output, shape index: {}]  }
   0x1 LB: > { %s717_s19 = sadd.s32 4294967295, %s872_s18   ;;  %p721_p0 = scmp.ge.s32.totalorder %s872_s18, 1  ;;  %s872_s18 = sphi %s904_s18, %s15_s18  }
   0x2   : > { %p188_p1 = scmp.lt.s32.totalorder %s872_s18, 3 }
   0x4   : > { %p189_p2 = pnand %p721_p0, %p188_p1 }
   0x5   : > { %v850_v0 = vld [vmem:[%s1101_s1] sm:$0xff] (!%p189_p2)   ;;  %s722_s22 = sshll.u32 (!%p189_p2), %s717_s19, 4  ;;  %v851_v1 = vld [vmem:[%s1101_s1 + $0x8] sm:$0xff] (!%p189_p2)   ;;  %v852_v2 = vld [vmem:[%s1101_s1 + $0x10] sm:$0xff] (!%p189_p2)  }
   0x6   : > { %192 = sbr.rel (%p189_p2) target bundleno = 506 (0x1fa), region = 40  ;;  %p217_p3 = scmp.lt.s32.totalorder (!%p189_p2), %s722_s22, 31  ;;  %778 = vmatprep.subr.bf16.mxu0 (!%p189_p2), %v850_v0  ;;  %v853_v3 = vld [vmem:[%s1101_s1 + $0x18] sm:$0xff] (!%p189_p2)   ;;  %v854_v7 = vld [vmem:[%s1101_s1 + $0x20] sm:$0xff] (!%p189_p2)   ;;  %v859_v9 = vld [vmem:[%s1103_s3 + $0x8] sm:$0xff] (!%p189_p2)  }
   0x7   : > { %779 = vmatpush3.bf16.msra.mxu0 (!%p189_p2), %v850_v0  ;;  %v858_v8 = vld [vmem:[%s1103_s3] sm:$0xff] (!%p189_p2)   ;;  %v855_v10 = vld [vmem:[%s1101_s1 + $0x28] sm:$0xff] (!%p189_p2)   ;;  %v860_v11 = vld [vmem:[%s1103_s3 + $0x10] sm:$0xff] (!%p189_p2)  }
   0x8   : > { %780 = vmatprep.subr.bf16.mxu0 (!%p189_p2), %v851_v1  ;;  %810 = vmatprep.subr.bf16.mxu1 (!%p189_p2), %v858_v8  ;;  %v856_v12 = vld [vmem:[%s1101_s1 + $0x30] sm:$0xff] (!%p189_p2)   ;;  %v861_v13 = vld [vmem:[%s1103_s3 + $0x18] sm:$0xff] (!%p189_p2)   ;;  %v862_v15 = vld [vmem:[%s1103_s3 + $0x20] sm:$0xff] (!%p189_p2)  }
   0x9   : > { %811 = vmatpush3.bf16.msra.mxu1 (!%p189_p2), %v858_v8  ;;  %v857_v14 = vld [vmem:[%s1101_s1 + $0x38] sm:$0xff] (!%p189_p2)   ;;  %v863_v21 = vld [vmem:[%s1103_s3 + $0x28] sm:$0xff] (!%p189_p2)   ;;  %v864_v38 = vld [vmem:[%s1103_s3 + $0x30] sm:$0xff] (!%p189_p2)  }
   0xa   : > { %812 = vmatprep.subr.bf16.mxu1 (!%p189_p2), %v859_v9  ;;  %v865_v39 = vld [vmem:[%s1103_s3 + $0x38] sm:$0xff] (!%p189_p2)   ;;  %v726_v40 = vld [vmem:[%s1102_s2] ss:$0 sm:$0xff] (!%p189_p2) }
   0xb   : > { %781 = vmatpush3.bf16.msra.mxu0 (!%p189_p2), %v851_v1 }
   0xc   : > { %782 = vmatprep.subr.bf16.mxu0 (!%p189_p2), %v852_v2 }
   0xd   : > { %s1107_s22 = smov (!%p217_p3, %s722_s22), 31  ;;  %813 = vmatpush3.bf16.msra.mxu1 %v859_v9 }
   0xe   : > { %s723_s27 = sshll.u32 %s1107_s22, 3  ;;  %814 = vmatprep.subr.bf16.mxu1 %v860_v11 }
   0xf   : > { %s929_s30 = scalar_lea.vmem %s1100_s0, %s723_s27  ;;  %783 = vmatpush3.bf16.msra.mxu0 %v852_v2  ;;  %s1050_s16 = scalar_lea.vmem %s1105_s5, %s723_s27 }
  0x10   : > { %v935_v4 = vld [vmem:[%s929_s30] sm:$0xff]  ;;  %v938_v5 = vld [vmem:[%s929_s30 + $0x8] sm:$0xff]  ;;  %784 = vmatprep.subr.bf16.mxu0 %v853_v3  ;;  %v970_v16 = vld [vmem:[%s929_s30 + $0x10] sm:$0xff] }
  0x11   : > { %v245_v6 = vpack.c.bf16 %v938_v5, %v935_v4  ;;  %815 = vmatpush3.bf16.msra.mxu1 %v860_v11  ;;  %v973_v17 = vld [vmem:[%s929_s30 + $0x18] sm:$0xff]  ;;  %v976_v18 = vld [vmem:[%s929_s30 + $0x20] sm:$0xff]  ;;  %v979_v19 = vld [vmem:[%s929_s30 + $0x28] sm:$0xff] }
  0x12   : > { %816 = vmatprep.subr.bf16.mxu1 %v861_v13  ;;  %v246_v20 = vpack.c.bf16 %v973_v17, %v970_v16  ;;  %v247_v22 = vpack.c.bf16 %v979_v19, %v976_v18  ;;  %v989_v23 = vld [vmem:[%s929_s30 + $0x30] sm:$0xff]  ;;  %v992_v24 = vld [vmem:[%s929_s30 + $0x38] sm:$0xff]  ;;  %v995_v25 = vld [vmem:[%s929_s30 + $0x40] sm:$0xff] }
  0x13   : > { %794 = vmatprep.mubr.bf16.mxu0 %v245_v6  ;;  %785 = vmatpush3.bf16.msra.mxu0 %v853_v3  ;;  %v998_v26 = vld [vmem:[%s929_s30 + $0x48] sm:$0xff]  ;;  %v248_v27 = vpack.c.bf16 %v992_v24, %v989_v23  ;;  %v1005_v29 = vld [vmem:[%s929_s30 + $0x50] sm:$0xff]  ;;  %v1008_v30 = vld [vmem:[%s929_s30 + $0x58] sm:$0xff] }
  0x14   : > { %786 = vmatprep.subr.bf16.mxu0 %v854_v7  ;;  %v249_v28 = vpack.c.bf16 %v998_v26, %v995_v25  ;;  %v1011_v31 = vld [vmem:[%s929_s30 + $0x60] sm:$0xff]  ;;  %v1014_v32 = vld [vmem:[%s929_s30 + $0x68] sm:$0xff]  ;;  %v250_v33 = vpack.c.bf16 %v1008_v30, %v1005_v29  ;;  %v1021_v35 = vld [vmem:[%s929_s30 + $0x70] sm:$0xff] }
  0x15   : > { %817 = vmatpush3.bf16.msra.mxu1 %v861_v13  ;;  %v251_v34 = vpack.c.bf16 %v1014_v32, %v1011_v31  ;;  %v1024_v36 = vld [vmem:[%s929_s30 + $0x78] sm:$0xff] }
  0x16   : > { %818 = vmatprep.subr.bf16.mxu1 %v862_v15  ;;  %v252_v37 = vpack.c.bf16 %v1024_v36, %v1021_v35 }
  0x17   : > { %787 = vmatpush3.bf16.msra.mxu0 %v854_v7 }
  0x18   : > { %788 = vmatprep.subr.bf16.mxu0 %v855_v10 }
  0x19   : > { %819 = vmatpush3.bf16.msra.mxu1 %v862_v15 }
  0x1a   : > { %820 = vmatprep.subr.bf16.mxu1 %v863_v21 }
  0x1b   : > { %789 = vmatpush3.bf16.msra.mxu0 %v855_v10 }
  0x1c   : > { %790 = vmatprep.subr.bf16.mxu0 %v856_v12 }
  0x1d   : > { %821 = vmatpush3.bf16.msra.mxu1 %v863_v21 }
  0x1e   : > { %822 = vmatprep.subr.bf16.mxu1 %v864_v38 }
  0x1f   : > { %791 = vmatpush3.bf16.msra.mxu0 %v856_v12 }
  0x20   : > { %792 = vmatprep.subr.bf16.mxu0 %v857_v14 }
  0x21   : > { %823 = vmatpush3.bf16.msra.mxu1 %v864_v38 }
  0x22   : > { %824 = vmatprep.subr.bf16.mxu1 %v865_v39 }
  0x23   : > { %793 = vmatpush3.bf16.msra.mxu0 %v857_v14 }
  0x25   : > { %825 = vmatpush3.bf16.msra.mxu1 %v865_v39 }
  0x26   : > { %795 = vmatmul.mubr.bf16.vlgmr.msra.gmra.mrb[0].mxu0 %v246_v20 }
  0x27   : > { %798 = vmatprep.mubr.bf16.mxu0 %v247_v22 }
  0x2e   : > { %799 = vmatmul.mubr.bf16.gmra.mrb[4].mxu0 %v248_v27 }
  0x2f   : > { %802 = vmatprep.mubr.bf16.mxu0 %v249_v28 }
  0x36   : > { %803 = vmatmul.mubr.bf16.gmra.mrb[8].mxu0 %v250_v33 }
  0x37   : > { %806 = vmatprep.mubr.bf16.mxu0 %v251_v34 }
  0x3e   : > { %807 = vmatmul.mubr.bf16.gmra.mrb[12].mxu0 %v252_v37 }
  0xf9   : > { %v796_v41 = vpop.f32.mrb[0].mxu0 }
  0xfa   : > { %v367_v42 = vadd.f32 %v796_v41, %v726_v40  ;;  %v358_v43 = vpop.f32.mrb[1].mxu0 }
  0xfb   : > { %v359_v44 = vadd.f32 %v726_v40, %v358_v43  ;;  %v797_v45 = vpop.f32.mrb[2].mxu0 }
  0xfc   : > { %v370_v46 = vadd.f32 %v797_v45, %v726_v40  ;;  %v361_v47 = vpop.f32.mrb[3].mxu0  ;;  %v423_v49 = vmax.f32 %v367_v42, 0.0 }
  0xfd   : > { %v362_v48 = vadd.f32 %v726_v40, %v361_v47  ;;  %v421_v51 = vmax.f32 %v359_v44, 0.0 }
  0xfe   : > { %v424_v50 = vmax.f32 %v370_v46, 0.0 }
  0xff   : > { %v422_v52 = vmax.f32 %v362_v48, 0.0 }
 0x100   : > { %v438_v53 = vpack.c.bf16 %v424_v50, %v423_v49  ;;  %v1040_v50 = vld [vmem:[%s1104_s4] ss:$0 sm:$0xff] }
 0x101   : > { %v800_v54 = vpop.f32.mrb[4].mxu0  ;;  %v437_v55 = vpack.c.bf16 %v422_v52, %v421_v51 }
 0x102   : > { %v383_v56 = vadd.f32 %v800_v54, %v726_v40  ;;  %v374_v57 = vpop.f32.mrb[5].mxu0 }
 0x103   : > { %v375_v58 = vadd.f32 %v726_v40, %v374_v57  ;;  %v801_v59 = vpop.f32.mrb[6].mxu0  ;;  %826 = vmatprep.mubr.bf16.mxu1 %v437_v55 }
 0x104   : > { %v386_v60 = vadd.f32 %v801_v59, %v726_v40  ;;  %v377_v61 = vpop.f32.mrb[7].mxu0  ;;  %827 = vmatmul.mubr.bf16.vlgmr.msra.gmra.mrb[0].mxu1 %v438_v53  ;;  %v427_v63 = vmax.f32 %v383_v56, 0.0 }
 0x105   : > { %v378_v62 = vadd.f32 %v726_v40, %v377_v61  ;;  %v425_v1 = vmax.f32 %v375_v58, 0.0 }
 0x106   : > { %v428_v0 = vmax.f32 %v386_v60, 0.0 }
 0x107   : > { %v426_v2 = vmax.f32 %v378_v62, 0.0 }
 0x108   : > { %v440_v3 = vpack.c.bf16 %v428_v0, %v427_v63 }
 0x109   : > { %v439_v6 = vpack.c.bf16 %v426_v2, %v425_v1  ;;  %v804_v7 = vpop.f32.mrb[8].mxu0 }
 0x10a   : > { %v399_v8 = vadd.f32 %v804_v7, %v726_v40  ;;  %v390_v9 = vpop.f32.mrb[9].mxu0 }
 0x10b   : > { %v391_v10 = vadd.f32 %v726_v40, %v390_v9  ;;  %v805_v11 = vpop.f32.mrb[10].mxu0  ;;  %830 = vmatprep.mubr.bf16.mxu1 %v439_v6 }
 0x10c   : > { %v402_v12 = vadd.f32 %v805_v11, %v726_v40  ;;  %v393_v13 = vpop.f32.mrb[11].mxu0  ;;  %831 = vmatmul.mubr.bf16.gmra.mrb[4].mxu1 %v440_v3  ;;  %v431_v15 = vmax.f32 %v399_v8, 0.0 }
 0x10d   : > { %v394_v14 = vadd.f32 %v726_v40, %v393_v13  ;;  %v429_v21 = vmax.f32 %v391_v10, 0.0 }
 0x10e   : > { %v432_v20 = vmax.f32 %v402_v12, 0.0 }
 0x10f   : > { %v430_v22 = vmax.f32 %v394_v14, 0.0 }
 0x110   : > { %v442_v27 = vpack.c.bf16 %v432_v20, %v431_v15 }
 0x111   : > { %v441_v28 = vpack.c.bf16 %v430_v22, %v429_v21  ;;  %v808_v33 = vpop.f32.mrb[12].mxu0 }
 0x112   : > { %v415_v34 = vadd.f32 %v808_v33, %v726_v40  ;;  %v406_v37 = vpop.f32.mrb[13].mxu0 }
 0x113   : > { %v407_v38 = vadd.f32 %v726_v40, %v406_v37  ;;  %v809_v39 = vpop.f32.mrb[14].mxu0  ;;  %834 = vmatprep.mubr.bf16.mxu1 %v441_v28 }
 0x114   : > { %v418_v41 = vadd.f32 %v809_v39, %v726_v40  ;;  %v409_v42 = vpop.f32.mrb[15].mxu0  ;;  %835 = vmatmul.mubr.bf16.gmra.mrb[8].mxu1 %v442_v27  ;;  %v435_v44 = vmax.f32 %v415_v34, 0.0 }
 0x115   : > { %v410_v43 = vadd.f32 %v726_v40, %v409_v42  ;;  %v433_v46 = vmax.f32 %v407_v38, 0.0 }
 0x116   : > { %v436_v45 = vmax.f32 %v418_v41, 0.0 }
 0x117   : > { %v434_v47 = vmax.f32 %v410_v43, 0.0 }
 0x118   : > { %v444_v48 = vpack.c.bf16 %v436_v45, %v435_v44 }
 0x119   : > { %v443_v49 = vpack.c.bf16 %v434_v47, %v433_v46 }
 0x11b   : > { %838 = vmatprep.mubr.bf16.mxu1 %v443_v49 }
 0x11c   : > { %839 = vmatmul.mubr.bf16.gmra.mrb[12].mxu1 %v444_v48 }
 0x1d7   : > { %v828_v51 = vpop.f32.mrb[0].mxu1 }
 0x1d8   : > { %v559_v52 = vadd.f32 %v828_v51, %v1040_v50  ;;  %v550_v53 = vpop.f32.mrb[1].mxu1 }
 0x1d9   : > { %v551_v40 = vadd.f32 %v1040_v50, %v550_v53  ;;  %v829_v54 = vpop.f32.mrb[2].mxu1 }
 0x1da   : > { %v615_v55 = vmax.f32 %v559_v52, 0.0  ;;  %v562_v56 = vadd.f32 %v829_v54, %v1040_v50  ;;  %v553_v57 = vpop.f32.mrb[3].mxu1 }
 0x1db   : > { %v613_v58 = vmax.f32 %v551_v40, 0.0  ;;  %v554_v59 = vadd.f32 %v1040_v50, %v553_v57 }
 0x1dc   : > { %v631_v60 = vadd.f32 %v615_v55, %v970_v16  ;;  %v616_v61 = vmax.f32 %v562_v56, 0.0 }
 0x1dd   : > { %v629_v62 = vadd.f32 %v613_v58, %v935_v4  ;;  %v614_v63 = vmax.f32 %v554_v59, 0.0 }
 0x1de   : > { %647 = vst [vmem:[%s1050_s16 + $0x10] sm:$0xff] %v631_v60  ;;  %v632_v0 = vadd.f32 %v616_v61, %v973_v17 }
 0x1df   : > { %645 = vst [vmem:[%s1050_s16] sm:$0xff] %v629_v62  ;;  %v630_v1 = vadd.f32 %v614_v63, %v938_v5  ;;  %v832_v2 = vpop.f32.mrb[4].mxu1 }
 0x1e0   : > { %648 = vst [vmem:[%s1050_s16 + $0x18] sm:$0xff] %v632_v0  ;;  %v575_v3 = vadd.f32 %v832_v2, %v1040_v50  ;;  %v566_v6 = vpop.f32.mrb[5].mxu1 }
 0x1e1   : > { %646 = vst [vmem:[%s1050_s16 + $0x8] sm:$0xff] %v630_v1  ;;  %v567_v16 = vadd.f32 %v1040_v50, %v566_v6  ;;  %v833_v7 = vpop.f32.mrb[6].mxu1 }
 0x1e2   : > { %v619_v4 = vmax.f32 %v575_v3, 0.0  ;;  %v578_v8 = vadd.f32 %v833_v7, %v1040_v50  ;;  %v569_v17 = vpop.f32.mrb[7].mxu1 }
 0x1e3   : > { %v617_v9 = vmax.f32 %v567_v16, 0.0  ;;  %v570_v5 = vadd.f32 %v1040_v50, %v569_v17 }
 0x1e4   : > { %v635_v10 = vadd.f32 %v619_v4, %v989_v23  ;;  %v620_v11 = vmax.f32 %v578_v8, 0.0 }
 0x1e5   : > { %v633_v12 = vadd.f32 %v617_v9, %v976_v18  ;;  %v618_v13 = vmax.f32 %v570_v5, 0.0 }
 0x1e6   : > { %651 = vst [vmem:[%s1050_s16 + $0x30] sm:$0xff] %v635_v10  ;;  %v636_v14 = vadd.f32 %v620_v11, %v992_v24 }
 0x1e7   : > { %649 = vst [vmem:[%s1050_s16 + $0x20] sm:$0xff] %v633_v12  ;;  %v634_v15 = vadd.f32 %v618_v13, %v979_v19  ;;  %v836_v20 = vpop.f32.mrb[8].mxu1 }
 0x1e8   : > { %652 = vst [vmem:[%s1050_s16 + $0x38] sm:$0xff] %v636_v14  ;;  %v591_v21 = vadd.f32 %v836_v20, %v1040_v50  ;;  %v582_v22 = vpop.f32.mrb[9].mxu1 }
 0x1e9   : > { %650 = vst [vmem:[%s1050_s16 + $0x28] sm:$0xff] %v634_v15  ;;  %v583_v23 = vadd.f32 %v1040_v50, %v582_v22  ;;  %v837_v27 = vpop.f32.mrb[10].mxu1 }
 0x1ea   : > { %v623_v18 = vmax.f32 %v591_v21, 0.0  ;;  %v594_v28 = vadd.f32 %v837_v27, %v1040_v50  ;;  %v585_v24 = vpop.f32.mrb[11].mxu1 }
 0x1eb   : > { %v621_v33 = vmax.f32 %v583_v23, 0.0  ;;  %v586_v19 = vadd.f32 %v1040_v50, %v585_v24 }
 0x1ec   : > { %v639_v34 = vadd.f32 %v623_v18, %v1005_v29  ;;  %v624_v37 = vmax.f32 %v594_v28, 0.0 }
 0x1ed   : > { %v637_v38 = vadd.f32 %v621_v33, %v995_v25  ;;  %v622_v39 = vmax.f32 %v586_v19, 0.0 }
 0x1ee   : > { %655 = vst [vmem:[%s1050_s16 + $0x50] sm:$0xff] %v639_v34  ;;  %v640_v41 = vadd.f32 %v624_v37, %v1008_v30 }
 0x1ef   : > { %653 = vst [vmem:[%s1050_s16 + $0x40] sm:$0xff] %v637_v38  ;;  %v638_v42 = vadd.f32 %v622_v39, %v998_v26  ;;  %v840_v43 = vpop.f32.mrb[12].mxu1 }
 0x1f0   : > { %656 = vst [vmem:[%s1050_s16 + $0x58] sm:$0xff] %v640_v41  ;;  %v607_v44 = vadd.f32 %v840_v43, %v1040_v50  ;;  %v598_v45 = vpop.f32.mrb[13].mxu1 }
 0x1f1   : > { %654 = vst [vmem:[%s1050_s16 + $0x48] sm:$0xff] %v638_v42  ;;  %v599_v29 = vadd.f32 %v1040_v50, %v598_v45  ;;  %v841_v25 = vpop.f32.mrb[14].mxu1 }
 0x1f2   : > { %v627_v46 = vmax.f32 %v607_v44, 0.0  ;;  %v610_v47 = vadd.f32 %v841_v25, %v1040_v50  ;;  %v601_v30 = vpop.f32.mrb[15].mxu1 }
 0x1f3   : > { %v625_v48 = vmax.f32 %v599_v29, 0.0  ;;  %v602_v26 = vadd.f32 %v1040_v50, %v601_v30 }
 0x1f4   : > { %v643_v49 = vadd.f32 %v627_v46, %v1021_v35  ;;  %v628_v51 = vmax.f32 %v610_v47, 0.0 }
 0x1f5   : > { %v641_v52 = vadd.f32 %v625_v48, %v1011_v31  ;;  %v626_v53 = vmax.f32 %v602_v26, 0.0 }
 0x1f6   : > { %659 = vst [vmem:[%s1050_s16 + $0x70] sm:$0xff] %v643_v49  ;;  %v644_v40 = vadd.f32 %v628_v51, %v1024_v36 }
 0x1f7   : > { %657 = vst [vmem:[%s1050_s16 + $0x60] sm:$0xff] %v641_v52  ;;  %v642_v54 = vadd.f32 %v626_v53, %v1014_v32 }
 0x1f8   : > { %660 = vst [vmem:[%s1050_s16 + $0x78] sm:$0xff] %v644_v40 }
 0x1f9   : > { %658 = vst [vmem:[%s1050_s16 + $0x68] sm:$0xff] %v642_v54 }
 0x1fa PF: > { %s15_s18 = sadd.s32 1, %s872_s18  }
 0x1fb   : > { %p12_p4 = scmp.ge.s32.totalorder %s15_s18, 4  }
 0x1fd   :  { %14 = sbr.rel (!%p12_p4) target bundleno = 1 (0x1), region = 70 }

</bundles_post_ra>
